<compile_context>
chip_gen: v7x
topology: tpu7x:2x2x1
jax: 0.10.0
libtpu: 0.0.40
codegen_flags: <defaults>
</compile_context>

<pallas_src>
import functools

import jax
import jax.numpy as jnp
from jax import lax
from jax.experimental import pallas as pl
from jax.experimental.pallas import tpu as pltpu


def _round_up(v, m):
    return ((v + m - 1) // m) * m


def _choose_time_chunk(T, b_pad, gate_width, hidden,
                       max_chunk=512, vmem_budget_bytes=8 * 1024 * 1024):
    """Largest time chunk whose double-buffered gx+out blocks fit the budget."""
    per_t = 2 * b_pad * (gate_width + hidden) * 4   # double-buffered f32 bytes / step
    fit = max(1, vmem_budget_bytes // per_t)
    return max(1, min(T, max_chunk, fit))


def _lstm_recurrence_kernel(gx_ref, whh_ref, h_out_ref, h_sc, c_sc, *,
                            hidden_size, batch, t_chunk, unroll):
    """gx_ref   : (t_chunk*B_pad, 4H) precomputed x @ W_ih^T + bias, g-cols x2
       whh_ref  : (H, 4H)             W_hh^T with g-gate columns pre-scaled by 2
       h_out_ref: (t_chunk*B_pad, H)  hidden states for this chunk
       h_sc/c_sc: (B_pad, H)          VMEM scratch carrying state across chunks."""
    @pl.when(pl.program_id(0) == 0)
    def _():
        h_sc[...] = jnp.zeros_like(h_sc)
        c_sc[...] = jnp.zeros_like(c_sc)

    H = hidden_size
    Bp = batch
    whh = whh_ref[...]                      # resident (H, 4H) for the whole chunk
    # TODO(synk): hold W_hh in the MXU weight registers across the chunk
    # (pltpu.matmul_push_rhs once + matmul_acc_lhs/matmul_pop per step) to drop
    # the per-step RHS restage from the serial critical path.

    def step(t, carry):
        h_prev, c_prev = carry
        row = pl.multiple_of(t * Bp, Bp)
        # Only the recurrent matmul remains inside the serial loop.
        gates = gx_ref[pl.ds(row, Bp), :] + jnp.dot(
            h_prev, whh, preferred_element_type=jnp.float32)
        # Single full-width transcendental pass: g columns were pre-scaled by 2
        # in the wrapper, so tanh(g_pre) = 2*sigmoid(2*g_pre) - 1 falls out of
        # the same sigmoid.  PyTorch gate order: i, f, g, o.
        sig = jax.nn.sigmoid(gates)
        i_g = sig[:, 0 * H:1 * H]
        f_g = sig[:, 1 * H:2 * H]
        g_g = 2.0 * sig[:, 2 * H:3 * H] - 1.0
        o_g = sig[:, 3 * H:4 * H]
        c_new = f_g * c_prev + i_g * g_g
        h_new = o_g * jnp.tanh(c_new)
        h_out_ref[pl.ds(row, Bp), :] = h_new
        return (h_new, c_new)

    h_fin, c_fin = lax.fori_loop(0, t_chunk, step,
                                 (h_sc[...], c_sc[...]), unroll=unroll)
    h_sc[...] = h_fin
    c_sc[...] = c_fin


@functools.partial(jax.jit, static_argnames=("max_chunk",))
def pallas_lstm_forward(x, w_ih, w_hh, b_ih, b_hh, w_out, b_out, *, max_chunk=512):
    """x: (B, T, nx) float32.  Weights in PyTorch layout:
       w_ih (4H, nx), w_hh (4H, H), b_ih/b_hh (4H,), w_out (ny, H), b_out (ny,)."""
    B, T, nx = x.shape
    H = w_hh.shape[1]
    G = 4 * H

    x = x.astype(jnp.float32)
    wih_t = jnp.transpose(w_ih).astype(jnp.float32)       # (nx, 4H)
    whh_t = jnp.transpose(w_hh).astype(jnp.float32)       # (H, 4H)
    bias = (b_ih + b_hh).astype(jnp.float32)              # (4H,)
    wout_t = jnp.transpose(w_out).astype(jnp.float32)     # (H, ny)
    bout = b_out.astype(jnp.float32)                      # (ny,)

    # Fold the tanh(x) = 2*sigmoid(2x) - 1 pre-scaling of the g-gate columns
    # into the weights/bias so the kernel needs only one sigmoid pass per step.
    scale = jnp.ones((G,), jnp.float32).at[2 * H:3 * H].set(2.0)
    wih_s = wih_t * scale
    whh_s = whh_t * scale
    bias_s = bias * scale

    # Batch padded to >= 8 sublanes; time padded to a multiple of the chunk.
    B_pad = max(8, _round_up(B, 8))
    t_chunk = _choose_time_chunk(T, B_pad, G, H, max_chunk=max_chunk)
    T_pad = _round_up(T, t_chunk)
    num_chunks = T_pad // t_chunk
    unroll = min(8, t_chunk)

    # Hoisted input projection, emitted directly as a dense (T_pad*B_pad, 4H)
    # slab in time-major order.  The transpose/pad acts on the small x tensor
    # (nx-wide), not the big gates tensor.
    x_t = jnp.transpose(x, (1, 0, 2))                                  # (T, B, nx)
    x_t = jnp.pad(x_t, ((0, T_pad - T), (0, B_pad - B), (0, 0)))
    gates_flat = x_t.reshape(T_pad * B_pad, nx) @ wih_s + bias_s       # (T_pad*B_pad, 4H)

    kernel = functools.partial(_lstm_recurrence_kernel, hidden_size=H,
                               batch=B_pad, t_chunk=t_chunk, unroll=unroll)

    hs_flat = pl.pallas_call(
        kernel,
        out_shape=jax.ShapeDtypeStruct((T_pad * B_pad, H), jnp.float32),
        grid_spec=pltpu.PrefetchScalarGridSpec(
            num_scalar_prefetch=0,
            grid=(num_chunks,),
            in_specs=[
                pl.BlockSpec((t_chunk * B_pad, G), lambda i: (i, 0)),  # gates chunk
                pl.BlockSpec((H, G), lambda i: (0, 0)),                # W_hh^T (constant)
            ],
            out_specs=pl.BlockSpec((t_chunk * B_pad, H), lambda i: (i, 0)),
            scratch_shapes=[
                pltpu.VMEM((B_pad, H), jnp.float32),   # h state
                pltpu.VMEM((B_pad, H), jnp.float32),   # c state
            ],
        ),
        compiler_params=pltpu.CompilerParams(
            dimension_semantics=("arbitrary",),        # time chunks carry state
        ),
        # TODO(synk): on v7x, add a leading "parallel" batch-shard grid axis so
        # the two TensorCores each run an independent slice of a large batch.
    )(gates_flat, whh_s)

    # Drop padding; hoisted output projection restores batch_first layout.
    hs = hs_flat.reshape(T_pad, B_pad, H)[:T, :B]                      # (T, B, H)
    out = jnp.einsum('tbh,hn->btn', hs, wout_t) + bout                 # (B, T, ny)
    return out


def _reference_lstm(x, w_ih, w_hh, b_ih, b_hh, w_out, b_out):
    """Pure-JAX reference matching torch.nn.LSTM (batch_first) + Linear."""
    B, T, nx = x.shape
    H = w_hh.shape[1]

    def step(carry, x_t):
        h, c = carry
        gates = x_t @ w_ih.T + h @ w_hh.T + b_ih + b_hh
        i = jax.nn.sigmoid(gates[:, 0 * H:1 * H])
        f = jax.nn.sigmoid(gates[:, 1 * H:2 * H])
        g = jnp.tanh(gates[:, 2 * H:3 * H])
        o = jax.nn.sigmoid(gates[:, 3 * H:4 * H])
        c_new = f * c + i * g
        h_new = o * jnp.tanh(c_new)
        return (h_new, c_new), h_new

    h0 = jnp.zeros((B, H), jnp.float32)
    c0 = jnp.zeros((B, H), jnp.float32)
    (_, _), hs = lax.scan(step, (h0, c0), jnp.transpose(x, (1, 0, 2)))
    hs = jnp.transpose(hs, (1, 0, 2))                 # (B, T, H)
    return hs @ w_out.T + b_out


if __name__ == "__main__":
    # Module hyperparameters (small, consistent with the forward pass).
    nx, ny, hidden_size = 8, 2, 32
    B, T = 2, 8

    key = jax.random.PRNGKey(0)
    ks = jax.random.split(key, 8)

    # Deterministic init mimicking PyTorch's uniform(-1/sqrt(H), 1/sqrt(H)).
    bound = 1.0 / jnp.sqrt(jnp.float32(hidden_size))
    w_ih = jax.random.uniform(ks[0], (4 * hidden_size, nx), jnp.float32, -bound, bound)
    w_hh = jax.random.uniform(ks[1], (4 * hidden_size, hidden_size), jnp.float32, -bound, bound)
    b_ih = jax.random.uniform(ks[2], (4 * hidden_size,), jnp.float32, -bound, bound)
    b_hh = jax.random.uniform(ks[3], (4 * hidden_size,), jnp.float32, -bound, bound)
    w_out = jax.random.uniform(ks[4], (ny, hidden_size), jnp.float32, -bound, bound)
    b_out = jax.random.uniform(ks[5], (ny,), jnp.float32, -bound, bound)

    x = jax.random.normal(ks[6], (B, T, nx), jnp.float32)

    out = pallas_lstm_forward(x, w_ih, w_hh, b_ih, b_hh, w_out, b_out)
    out = jax.block_until_ready(out)
    ref = _reference_lstm(x, w_ih, w_hh, b_ih, b_hh, w_out, b_out)
    assert out.shape == (B, T, ny)
    assert jnp.allclose(out, ref, atol=2e-5, rtol=2e-5), "mismatch vs reference"

    # Second check: prime T and non-multiple-of-8 batch exercise the time/batch
    # padding path and multi-chunk state carry.
    B2, T2 = 3, 13
    x2 = jax.random.normal(ks[7], (B2, T2, nx), jnp.float32)
    out2 = pallas_lstm_forward(x2, w_ih, w_hh, b_ih, b_hh, w_out, b_out, max_chunk=4)
    out2 = jax.block_until_ready(out2)
    ref2 = _reference_lstm(x2, w_ih, w_hh, b_ih, b_hh, w_out, b_out)
    assert out2.shape == (B2, T2, ny)
    assert jnp.allclose(out2, ref2, atol=2e-5, rtol=2e-5), "mismatch vs reference (padded)"

    print("KERNEL_OK")
</pallas_src>

<mosaic_0001>
module attributes {stable_mosaic.version = 11 : i64} {
  func.func @_lstm_recurrence_kernel(%arg0: i32, %arg1: memref<64x128xf32, #tpu.memory_space<vmem>>, %arg2: memref<32x128xf32, #tpu.memory_space<vmem>>, %arg3: memref<64x32xf32, #tpu.memory_space<vmem>>, %arg4: memref<8x32xf32, #tpu.memory_space<vmem>>, %arg5: memref<8x32xf32, #tpu.memory_space<vmem>>) attributes {dimension_semantics = [#tpu.dimension_semantics<arbitrary>], iteration_bounds = array<i64: 1>, scalar_prefetch = 0 : i64, scratch_operands = 2 : i64, tpu.core_type = #tpu.core_type<tc>, window_params = [{transform_indices = @transform_0, window_bounds = array<i64: 64, 128>}, {pipeline_mode = #tpu.pipeline_mode<synchronous>, transform_indices = @transform_1, window_bounds = array<i64: 32, 128>}, {transform_indices = @transform_2, window_bounds = array<i64: 64, 32>}]} {
    %c0_i32 = arith.constant 0 : i32
    %0 = arith.cmpi eq, %arg0, %c0_i32 : i32
    %1 = arith.extui %0 : i1 to i32
    %c0_i32_0 = arith.constant 0 : i32
    %2 = arith.cmpi ne, %1, %c0_i32_0 : i32
    scf.if %2 {
      %cst_66 = arith.constant 0.000000e+00 : f32
      %216 = vector.broadcast %cst_66 : f32 to vector<8x32xf32>
      %c0_67 = arith.constant 0 : index
      %c0_68 = arith.constant 0 : index
      %217 = vector.load %arg4[%c0_67, %c0_68] : memref<8x32xf32, #tpu.memory_space<vmem>>, vector<8x32xf32>
      tpu.vector_store %arg4[%c0_67, %c0_68], %216 {strides = array<i32>} : memref<8x32xf32, #tpu.memory_space<vmem>>, vector<8x32xf32>,
      %cst_69 = arith.constant 0.000000e+00 : f32
      %218 = vector.broadcast %cst_69 : f32 to vector<8x32xf32>
      %c0_70 = arith.constant 0 : index
      %c0_71 = arith.constant 0 : index
      %219 = vector.load %arg5[%c0_70, %c0_71] : memref<8x32xf32, #tpu.memory_space<vmem>>, vector<8x32xf32>
      tpu.vector_store %arg5[%c0_70, %c0_71], %218 {strides = array<i32>} : memref<8x32xf32, #tpu.memory_space<vmem>>, vector<8x32xf32>,
    } else {
    }
    %c0 = arith.constant 0 : index
    %c0_1 = arith.constant 0 : index
    %3 = vector.load %arg2[%c0, %c0_1] : memref<32x128xf32, #tpu.memory_space<vmem>>, vector<32x128xf32>
    %c0_2 = arith.constant 0 : index
    %c0_3 = arith.constant 0 : index
    %4 = vector.load %arg4[%c0_2, %c0_3] : memref<8x32xf32, #tpu.memory_space<vmem>>, vector<8x32xf32>
    %c0_4 = arith.constant 0 : index
    %c0_5 = arith.constant 0 : index
    %5 = vector.load %arg5[%c0_4, %c0_5] : memref<8x32xf32, #tpu.memory_space<vmem>>, vector<8x32xf32>
    %c0_i32_6 = arith.constant 0 : i32
    %c8_i32 = arith.constant 8 : i32
    %6 = arith.muli %c0_i32_6, %c8_i32 : i32
    %7 = tpu.assume_multiple %6, 8 : i32
    %8 = arith.index_cast %7 : i32 to index
    %c0_7 = arith.constant 0 : index
    %9 = vector.load %arg1[%8, %c0_7] : memref<64x128xf32, #tpu.memory_space<vmem>>, vector<8x128xf32>
    %cst = arith.constant dense<0.000000e+00> : vector<8x128xf32>
    %10 = tpu.matmul %4, %3, %cst {dimension_numbers = #tpu.dot_dimension_numbers<[1], [0], [0], [1], [0, 0, 1, 1], [], []>} : vector<8x32xf32>, vector<32x128xf32>, vector<8x128xf32> -> vector<8x128xf32>
    %11 = arith.addf %9, %10 : vector<8x128xf32>
    %12 = arith.negf %11 : vector<8x128xf32>
    %13 = math.exp %12 : vector<8x128xf32>
    %cst_8 = arith.constant 1.000000e+00 : f32
    %14 = vector.broadcast %cst_8 : f32 to vector<8x128xf32>
    %15 = arith.addf %14, %13 : vector<8x128xf32>
    %16 = arith.divf %14, %15 : vector<8x128xf32>
    %17 = vector.extract_strided_slice %16 {offsets = [0, 0], sizes = [8, 32], strides = [1, 1]} : vector<8x128xf32> to vector<8x32xf32>
    %18 = vector.extract_strided_slice %16 {offsets = [0, 32], sizes = [8, 32], strides = [1, 1]} : vector<8x128xf32> to vector<8x32xf32>
    %19 = vector.extract_strided_slice %16 {offsets = [0, 64], sizes = [8, 32], strides = [1, 1]} : vector<8x128xf32> to vector<8x32xf32>
    %cst_9 = arith.constant 2.000000e+00 : f32
    %20 = vector.broadcast %cst_9 : f32 to vector<8x32xf32>
    %21 = arith.mulf %20, %19 : vector<8x32xf32>
    %cst_10 = arith.constant 1.000000e+00 : f32
    %22 = vector.broadcast %cst_10 : f32 to vector<8x32xf32>
    %23 = arith.subf %21, %22 : vector<8x32xf32>
    %24 = vector.extract_strided_slice %16 {offsets = [0, 96], sizes = [8, 32], strides = [1, 1]} : vector<8x128xf32> to vector<8x32xf32>
    %25 = arith.mulf %18, %5 : vector<8x32xf32>
    %26 = arith.mulf %17, %23 : vector<8x32xf32>
    %27 = arith.addf %25, %26 : vector<8x32xf32>
    %28 = math.tanh %27 : vector<8x32xf32>
    %29 = arith.mulf %24, %28 : vector<8x32xf32>
    %30 = arith.index_cast %7 : i32 to index
    %c0_11 = arith.constant 0 : index
    %31 = vector.load %arg3[%30, %c0_11] : memref<64x32xf32, #tpu.memory_space<vmem>>, vector<8x32xf32>
    tpu.vector_store %arg3[%30, %c0_11], %29 {strides = array<i32>} : memref<64x32xf32, #tpu.memory_space<vmem>>, vector<8x32xf32>,
    %c1_i32 = arith.constant 1 : i32
    %c8_i32_12 = arith.constant 8 : i32
    %32 = arith.muli %c1_i32, %c8_i32_12 : i32
    %33 = tpu.assume_multiple %32, 8 : i32
    %34 = arith.index_cast %33 : i32 to index
    %c0_13 = arith.constant 0 : index
    %35 = vector.load %arg1[%34, %c0_13] : memref<64x128xf32, #tpu.memory_space<vmem>>, vector<8x128xf32>
    %cst_14 = arith.constant dense<0.000000e+00> : vector<8x128xf32>
    %36 = tpu.matmul %29, %3, %cst_14 {dimension_numbers = #tpu.dot_dimension_numbers<[1], [0], [0], [1], [0, 0, 1, 1], [], []>} : vector<8x32xf32>, vector<32x128xf32>, vector<8x128xf32> -> vector<8x128xf32>
    %37 = arith.addf %35, %36 : vector<8x128xf32>
    %38 = arith.negf %37 : vector<8x128xf32>
    %39 = math.exp %38 : vector<8x128xf32>
    %cst_15 = arith.constant 1.000000e+00 : f32
    %40 = vector.broadcast %cst_15 : f32 to vector<8x128xf32>
    %41 = arith.addf %40, %39 : vector<8x128xf32>
    %42 = arith.divf %40, %41 : vector<8x128xf32>
    %43 = vector.extract_strided_slice %42 {offsets = [0, 0], sizes = [8, 32], strides = [1, 1]} : vector<8x128xf32> to vector<8x32xf32>
    %44 = vector.extract_strided_slice %42 {offsets = [0, 32], sizes = [8, 32], strides = [1, 1]} : vector<8x128xf32> to vector<8x32xf32>
    %45 = vector.extract_strided_slice %42 {offsets = [0, 64], sizes = [8, 32], strides = [1, 1]} : vector<8x128xf32> to vector<8x32xf32>
    %cst_16 = arith.constant 2.000000e+00 : f32
    %46 = vector.broadcast %cst_16 : f32 to vector<8x32xf32>
    %47 = arith.mulf %46, %45 : vector<8x32xf32>
    %cst_17 = arith.constant 1.000000e+00 : f32
    %48 = vector.broadcast %cst_17 : f32 to vector<8x32xf32>
    %49 = arith.subf %47, %48 : vector<8x32xf32>
    %50 = vector.extract_strided_slice %42 {offsets = [0, 96], sizes = [8, 32], strides = [1, 1]} : vector<8x128xf32> to vector<8x32xf32>
    %51 = arith.mulf %44, %27 : vector<8x32xf32>
    %52 = arith.mulf %43, %49 : vector<8x32xf32>
    %53 = arith.addf %51, %52 : vector<8x32xf32>
    %54 = math.tanh %53 : vector<8x32xf32>
    %55 = arith.mulf %50, %54 : vector<8x32xf32>
    %56 = arith.index_cast %33 : i32 to index
    %c0_18 = arith.constant 0 : index
    %57 = vector.load %arg3[%56, %c0_18] : memref<64x32xf32, #tpu.memory_space<vmem>>, vector<8x32xf32>
    tpu.vector_store %arg3[%56, %c0_18], %55 {strides = array<i32>} : memref<64x32xf32, #tpu.memory_space<vmem>>, vector<8x32xf32>,
    %c2_i32 = arith.constant 2 : i32
    %c8_i32_19 = arith.constant 8 : i32
    %58 = arith.muli %c2_i32, %c8_i32_19 : i32
    %59 = tpu.assume_multiple %58, 8 : i32
    %60 = arith.index_cast %59 : i32 to index
    %c0_20 = arith.constant 0 : index
    %61 = vector.load %arg1[%60, %c0_20] : memref<64x128xf32, #tpu.memory_space<vmem>>, vector<8x128xf32>
    %cst_21 = arith.constant dense<0.000000e+00> : vector<8x128xf32>
    %62 = tpu.matmul %55, %3, %cst_21 {dimension_numbers = #tpu.dot_dimension_numbers<[1], [0], [0], [1], [0, 0, 1, 1], [], []>} : vector<8x32xf32>, vector<32x128xf32>, vector<8x128xf32> -> vector<8x128xf32>
    %63 = arith.addf %61, %62 : vector<8x128xf32>
    %64 = arith.negf %63 : vector<8x128xf32>
    %65 = math.exp %64 : vector<8x128xf32>
    %cst_22 = arith.constant 1.000000e+00 : f32
    %66 = vector.broadcast %cst_22 : f32 to vector<8x128xf32>
    %67 = arith.addf %66, %65 : vector<8x128xf32>
    %68 = arith.divf %66, %67 : vector<8x128xf32>
    %69 = vector.extract_strided_slice %68 {offsets = [0, 0], sizes = [8, 32], strides = [1, 1]} : vector<8x128xf32> to vector<8x32xf32>
    %70 = vector.extract_strided_slice %68 {offsets = [0, 32], sizes = [8, 32], strides = [1, 1]} : vector<8x128xf32> to vector<8x32xf32>
    %71 = vector.extract_strided_slice %68 {offsets = [0, 64], sizes = [8, 32], strides = [1, 1]} : vector<8x128xf32> to vector<8x32xf32>
    %cst_23 = arith.constant 2.000000e+00 : f32
    %72 = vector.broadcast %cst_23 : f32 to vector<8x32xf32>
    %73 = arith.mulf %72, %71 : vector<8x32xf32>
    %cst_24 = arith.constant 1.000000e+00 : f32
    %74 = vector.broadcast %cst_24 : f32 to vector<8x32xf32>
    %75 = arith.subf %73, %74 : vector<8x32xf32>
    %76 = vector.extract_strided_slice %68 {offsets = [0, 96], sizes = [8, 32], strides = [1, 1]} : vector<8x128xf32> to vector<8x32xf32>
    %77 = arith.mulf %70, %53 : vector<8x32xf32>
    %78 = arith.mulf %69, %75 : vector<8x32xf32>
    %79 = arith.addf %77, %78 : vector<8x32xf32>
    %80 = math.tanh %79 : vector<8x32xf32>
    %81 = arith.mulf %76, %80 : vector<8x32xf32>
    %82 = arith.index_cast %59 : i32 to index
    %c0_25 = arith.constant 0 : index
    %83 = vector.load %arg3[%82, %c0_25] : memref<64x32xf32, #tpu.memory_space<vmem>>, vector<8x32xf32>
    tpu.vector_store %arg3[%82, %c0_25], %81 {strides = array<i32>} : memref<64x32xf32, #tpu.memory_space<vmem>>, vector<8x32xf32>,
    %c3_i32 = arith.constant 3 : i32
    %c8_i32_26 = arith.constant 8 : i32
    %84 = arith.muli %c3_i32, %c8_i32_26 : i32
    %85 = tpu.assume_multiple %84, 8 : i32
    %86 = arith.index_cast %85 : i32 to index
    %c0_27 = arith.constant 0 : index
    %87 = vector.load %arg1[%86, %c0_27] : memref<64x128xf32, #tpu.memory_space<vmem>>, vector<8x128xf32>
    %cst_28 = arith.constant dense<0.000000e+00> : vector<8x128xf32>
    %88 = tpu.matmul %81, %3, %cst_28 {dimension_numbers = #tpu.dot_dimension_numbers<[1], [0], [0], [1], [0, 0, 1, 1], [], []>} : vector<8x32xf32>, vector<32x128xf32>, vector<8x128xf32> -> vector<8x128xf32>
    %89 = arith.addf %87, %88 : vector<8x128xf32>
    %90 = arith.negf %89 : vector<8x128xf32>
    %91 = math.exp %90 : vector<8x128xf32>
    %cst_29 = arith.constant 1.000000e+00 : f32
    %92 = vector.broadcast %cst_29 : f32 to vector<8x128xf32>
    %93 = arith.addf %92, %91 : vector<8x128xf32>
    %94 = arith.divf %92, %93 : vector<8x128xf32>
    %95 = vector.extract_strided_slice %94 {offsets = [0, 0], sizes = [8, 32], strides = [1, 1]} : vector<8x128xf32> to vector<8x32xf32>
    %96 = vector.extract_strided_slice %94 {offsets = [0, 32], sizes = [8, 32], strides = [1, 1]} : vector<8x128xf32> to vector<8x32xf32>
    %97 = vector.extract_strided_slice %94 {offsets = [0, 64], sizes = [8, 32], strides = [1, 1]} : vector<8x128xf32> to vector<8x32xf32>
    %cst_30 = arith.constant 2.000000e+00 : f32
    %98 = vector.broadcast %cst_30 : f32 to vector<8x32xf32>
    %99 = arith.mulf %98, %97 : vector<8x32xf32>
    %cst_31 = arith.constant 1.000000e+00 : f32
    %100 = vector.broadcast %cst_31 : f32 to vector<8x32xf32>
    %101 = arith.subf %99, %100 : vector<8x32xf32>
    %102 = vector.extract_strided_slice %94 {offsets = [0, 96], sizes = [8, 32], strides = [1, 1]} : vector<8x128xf32> to vector<8x32xf32>
    %103 = arith.mulf %96, %79 : vector<8x32xf32>
    %104 = arith.mulf %95, %101 : vector<8x32xf32>
    %105 = arith.addf %103, %104 : vector<8x32xf32>
    %106 = math.tanh %105 : vector<8x32xf32>
    %107 = arith.mulf %102, %106 : vector<8x32xf32>
    %108 = arith.index_cast %85 : i32 to index
    %c0_32 = arith.constant 0 : index
    %109 = vector.load %arg3[%108, %c0_32] : memref<64x32xf32, #tpu.memory_space<vmem>>, vector<8x32xf32>
    tpu.vector_store %arg3[%108, %c0_32], %107 {strides = array<i32>} : memref<64x32xf32, #tpu.memory_space<vmem>>, vector<8x32xf32>,
    %c4_i32 = arith.constant 4 : i32
    %c8_i32_33 = arith.constant 8 : i32
    %110 = arith.muli %c4_i32, %c8_i32_33 : i32
    %111 = tpu.assume_multiple %110, 8 : i32
    %112 = arith.index_cast %111 : i32 to index
    %c0_34 = arith.constant 0 : index
    %113 = vector.load %arg1[%112, %c0_34] : memref<64x128xf32, #tpu.memory_space<vmem>>, vector<8x128xf32>
    %cst_35 = arith.constant dense<0.000000e+00> : vector<8x128xf32>
    %114 = tpu.matmul %107, %3, %cst_35 {dimension_numbers = #tpu.dot_dimension_numbers<[1], [0], [0], [1], [0, 0, 1, 1], [], []>} : vector<8x32xf32>, vector<32x128xf32>, vector<8x128xf32> -> vector<8x128xf32>
    %115 = arith.addf %113, %114 : vector<8x128xf32>
    %116 = arith.negf %115 : vector<8x128xf32>
    %117 = math.exp %116 : vector<8x128xf32>
    %cst_36 = arith.constant 1.000000e+00 : f32
    %118 = vector.broadcast %cst_36 : f32 to vector<8x128xf32>
    %119 = arith.addf %118, %117 : vector<8x128xf32>
    %120 = arith.divf %118, %119 : vector<8x128xf32>
    %121 = vector.extract_strided_slice %120 {offsets = [0, 0], sizes = [8, 32], strides = [1, 1]} : vector<8x128xf32> to vector<8x32xf32>
    %122 = vector.extract_strided_slice %120 {offsets = [0, 32], sizes = [8, 32], strides = [1, 1]} : vector<8x128xf32> to vector<8x32xf32>
    %123 = vector.extract_strided_slice %120 {offsets = [0, 64], sizes = [8, 32], strides = [1, 1]} : vector<8x128xf32> to vector<8x32xf32>
    %cst_37 = arith.constant 2.000000e+00 : f32
    %124 = vector.broadcast %cst_37 : f32 to vector<8x32xf32>
    %125 = arith.mulf %124, %123 : vector<8x32xf32>
    %cst_38 = arith.constant 1.000000e+00 : f32
    %126 = vector.broadcast %cst_38 : f32 to vector<8x32xf32>
    %127 = arith.subf %125, %126 : vector<8x32xf32>
    %128 = vector.extract_strided_slice %120 {offsets = [0, 96], sizes = [8, 32], strides = [1, 1]} : vector<8x128xf32> to vector<8x32xf32>
    %129 = arith.mulf %122, %105 : vector<8x32xf32>
    %130 = arith.mulf %121, %127 : vector<8x32xf32>
    %131 = arith.addf %129, %130 : vector<8x32xf32>
    %132 = math.tanh %131 : vector<8x32xf32>
    %133 = arith.mulf %128, %132 : vector<8x32xf32>
    %134 = arith.index_cast %111 : i32 to index
    %c0_39 = arith.constant 0 : index
    %135 = vector.load %arg3[%134, %c0_39] : memref<64x32xf32, #tpu.memory_space<vmem>>, vector<8x32xf32>
    tpu.vector_store %arg3[%134, %c0_39], %133 {strides = array<i32>} : memref<64x32xf32, #tpu.memory_space<vmem>>, vector<8x32xf32>,
    %c5_i32 = arith.constant 5 : i32
    %c8_i32_40 = arith.constant 8 : i32
    %136 = arith.muli %c5_i32, %c8_i32_40 : i32
    %137 = tpu.assume_multiple %136, 8 : i32
    %138 = arith.index_cast %137 : i32 to index
    %c0_41 = arith.constant 0 : index
    %139 = vector.load %arg1[%138, %c0_41] : memref<64x128xf32, #tpu.memory_space<vmem>>, vector<8x128xf32>
    %cst_42 = arith.constant dense<0.000000e+00> : vector<8x128xf32>
    %140 = tpu.matmul %133, %3, %cst_42 {dimension_numbers = #tpu.dot_dimension_numbers<[1], [0], [0], [1], [0, 0, 1, 1], [], []>} : vector<8x32xf32>, vector<32x128xf32>, vector<8x128xf32> -> vector<8x128xf32>
    %141 = arith.addf %139, %140 : vector<8x128xf32>
    %142 = arith.negf %141 : vector<8x128xf32>
    %143 = math.exp %142 : vector<8x128xf32>
    %cst_43 = arith.constant 1.000000e+00 : f32
    %144 = vector.broadcast %cst_43 : f32 to vector<8x128xf32>
    %145 = arith.addf %144, %143 : vector<8x128xf32>
    %146 = arith.divf %144, %145 : vector<8x128xf32>
    %147 = vector.extract_strided_slice %146 {offsets = [0, 0], sizes = [8, 32], strides = [1, 1]} : vector<8x128xf32> to vector<8x32xf32>
    %148 = vector.extract_strided_slice %146 {offsets = [0, 32], sizes = [8, 32], strides = [1, 1]} : vector<8x128xf32> to vector<8x32xf32>
    %149 = vector.extract_strided_slice %146 {offsets = [0, 64], sizes = [8, 32], strides = [1, 1]} : vector<8x128xf32> to vector<8x32xf32>
    %cst_44 = arith.constant 2.000000e+00 : f32
    %150 = vector.broadcast %cst_44 : f32 to vector<8x32xf32>
    %151 = arith.mulf %150, %149 : vector<8x32xf32>
    %cst_45 = arith.constant 1.000000e+00 : f32
    %152 = vector.broadcast %cst_45 : f32 to vector<8x32xf32>
    %153 = arith.subf %151, %152 : vector<8x32xf32>
    %154 = vector.extract_strided_slice %146 {offsets = [0, 96], sizes = [8, 32], strides = [1, 1]} : vector<8x128xf32> to vector<8x32xf32>
    %155 = arith.mulf %148, %131 : vector<8x32xf32>
    %156 = arith.mulf %147, %153 : vector<8x32xf32>
    %157 = arith.addf %155, %156 : vector<8x32xf32>
    %158 = math.tanh %157 : vector<8x32xf32>
    %159 = arith.mulf %154, %158 : vector<8x32xf32>
    %160 = arith.index_cast %137 : i32 to index
    %c0_46 = arith.constant 0 : index
    %161 = vector.load %arg3[%160, %c0_46] : memref<64x32xf32, #tpu.memory_space<vmem>>, vector<8x32xf32>
    tpu.vector_store %arg3[%160, %c0_46], %159 {strides = array<i32>} : memref<64x32xf32, #tpu.memory_space<vmem>>, vector<8x32xf32>,
    %c6_i32 = arith.constant 6 : i32
    %c8_i32_47 = arith.constant 8 : i32
    %162 = arith.muli %c6_i32, %c8_i32_47 : i32
    %163 = tpu.assume_multiple %162, 8 : i32
    %164 = arith.index_cast %163 : i32 to index
    %c0_48 = arith.constant 0 : index
    %165 = vector.load %arg1[%164, %c0_48] : memref<64x128xf32, #tpu.memory_space<vmem>>, vector<8x128xf32>
    %cst_49 = arith.constant dense<0.000000e+00> : vector<8x128xf32>
    %166 = tpu.matmul %159, %3, %cst_49 {dimension_numbers = #tpu.dot_dimension_numbers<[1], [0], [0], [1], [0, 0, 1, 1], [], []>} : vector<8x32xf32>, vector<32x128xf32>, vector<8x128xf32> -> vector<8x128xf32>
    %167 = arith.addf %165, %166 : vector<8x128xf32>
    %168 = arith.negf %167 : vector<8x128xf32>
    %169 = math.exp %168 : vector<8x128xf32>
    %cst_50 = arith.constant 1.000000e+00 : f32
    %170 = vector.broadcast %cst_50 : f32 to vector<8x128xf32>
    %171 = arith.addf %170, %169 : vector<8x128xf32>
    %172 = arith.divf %170, %171 : vector<8x128xf32>
    %173 = vector.extract_strided_slice %172 {offsets = [0, 0], sizes = [8, 32], strides = [1, 1]} : vector<8x128xf32> to vector<8x32xf32>
    %174 = vector.extract_strided_slice %172 {offsets = [0, 32], sizes = [8, 32], strides = [1, 1]} : vector<8x128xf32> to vector<8x32xf32>
    %175 = vector.extract_strided_slice %172 {offsets = [0, 64], sizes = [8, 32], strides = [1, 1]} : vector<8x128xf32> to vector<8x32xf32>
    %cst_51 = arith.constant 2.000000e+00 : f32
    %176 = vector.broadcast %cst_51 : f32 to vector<8x32xf32>
    %177 = arith.mulf %176, %175 : vector<8x32xf32>
    %cst_52 = arith.constant 1.000000e+00 : f32
    %178 = vector.broadcast %cst_52 : f32 to vector<8x32xf32>
    %179 = arith.subf %177, %178 : vector<8x32xf32>
    %180 = vector.extract_strided_slice %172 {offsets = [0, 96], sizes = [8, 32], strides = [1, 1]} : vector<8x128xf32> to vector<8x32xf32>
    %181 = arith.mulf %174, %157 : vector<8x32xf32>
    %182 = arith.mulf %173, %179 : vector<8x32xf32>
    %183 = arith.addf %181, %182 : vector<8x32xf32>
    %184 = math.tanh %183 : vector<8x32xf32>
    %185 = arith.mulf %180, %184 : vector<8x32xf32>
    %186 = arith.index_cast %163 : i32 to index
    %c0_53 = arith.constant 0 : index
    %187 = vector.load %arg3[%186, %c0_53] : memref<64x32xf32, #tpu.memory_space<vmem>>, vector<8x32xf32>
    tpu.vector_store %arg3[%186, %c0_53], %185 {strides = array<i32>} : memref<64x32xf32, #tpu.memory_space<vmem>>, vector<8x32xf32>,
    %c7_i32 = arith.constant 7 : i32
    %c8_i32_54 = arith.constant 8 : i32
    %188 = arith.muli %c7_i32, %c8_i32_54 : i32
    %189 = tpu.assume_multiple %188, 8 : i32
    %190 = arith.index_cast %189 : i32 to index
    %c0_55 = arith.constant 0 : index
    %191 = vector.load %arg1[%190, %c0_55] : memref<64x128xf32, #tpu.memory_space<vmem>>, vector<8x128xf32>
    %cst_56 = arith.constant dense<0.000000e+00> : vector<8x128xf32>
    %192 = tpu.matmul %185, %3, %cst_56 {dimension_numbers = #tpu.dot_dimension_numbers<[1], [0], [0], [1], [0, 0, 1, 1], [], []>} : vector<8x32xf32>, vector<32x128xf32>, vector<8x128xf32> -> vector<8x128xf32>
    %193 = arith.addf %191, %192 : vector<8x128xf32>
    %194 = arith.negf %193 : vector<8x128xf32>
    %195 = math.exp %194 : vector<8x128xf32>
    %cst_57 = arith.constant 1.000000e+00 : f32
    %196 = vector.broadcast %cst_57 : f32 to vector<8x128xf32>
    %197 = arith.addf %196, %195 : vector<8x128xf32>
    %198 = arith.divf %196, %197 : vector<8x128xf32>
    %199 = vector.extract_strided_slice %198 {offsets = [0, 0], sizes = [8, 32], strides = [1, 1]} : vector<8x128xf32> to vector<8x32xf32>
    %200 = vector.extract_strided_slice %198 {offsets = [0, 32], sizes = [8, 32], strides = [1, 1]} : vector<8x128xf32> to vector<8x32xf32>
    %201 = vector.extract_strided_slice %198 {offsets = [0, 64], sizes = [8, 32], strides = [1, 1]} : vector<8x128xf32> to vector<8x32xf32>
    %cst_58 = arith.constant 2.000000e+00 : f32
    %202 = vector.broadcast %cst_58 : f32 to vector<8x32xf32>
    %203 = arith.mulf %202, %201 : vector<8x32xf32>
    %cst_59 = arith.constant 1.000000e+00 : f32
    %204 = vector.broadcast %cst_59 : f32 to vector<8x32xf32>
    %205 = arith.subf %203, %204 : vector<8x32xf32>
    %206 = vector.extract_strided_slice %198 {offsets = [0, 96], sizes = [8, 32], strides = [1, 1]} : vector<8x128xf32> to vector<8x32xf32>
    %207 = arith.mulf %200, %183 : vector<8x32xf32>
    %208 = arith.mulf %199, %205 : vector<8x32xf32>
    %209 = arith.addf %207, %208 : vector<8x32xf32>
    %210 = math.tanh %209 : vector<8x32xf32>
    %211 = arith.mulf %206, %210 : vector<8x32xf32>
    %212 = arith.index_cast %189 : i32 to index
    %c0_60 = arith.constant 0 : index
    %213 = vector.load %arg3[%212, %c0_60] : memref<64x32xf32, #tpu.memory_space<vmem>>, vector<8x32xf32>
    tpu.vector_store %arg3[%212, %c0_60], %211 {strides = array<i32>} : memref<64x32xf32, #tpu.memory_space<vmem>>, vector<8x32xf32>,
    %c8_i32_61 = arith.constant 8 : i32
    %c0_62 = arith.constant 0 : index
    %c0_63 = arith.constant 0 : index
    %214 = vector.load %arg4[%c0_62, %c0_63] : memref<8x32xf32, #tpu.memory_space<vmem>>, vector<8x32xf32>
    tpu.vector_store %arg4[%c0_62, %c0_63], %211 {strides = array<i32>} : memref<8x32xf32, #tpu.memory_space<vmem>>, vector<8x32xf32>,
    %c0_64 = arith.constant 0 : index
    %c0_65 = arith.constant 0 : index
    %215 = vector.load %arg5[%c0_64, %c0_65] : memref<8x32xf32, #tpu.memory_space<vmem>>, vector<8x32xf32>
    tpu.vector_store %arg5[%c0_64, %c0_65], %209 {strides = array<i32>} : memref<8x32xf32, #tpu.memory_space<vmem>>, vector<8x32xf32>,
    return
  }
  func.func @transform_0(%arg0: i32) -> (i32, i32) {
    %c0_i32 = arith.constant 0 : i32
    %c0_i32_0 = arith.constant 0 : i32
    return %arg0, %c0_i32 : i32, i32
  }
  func.func @transform_1(%arg0: i32) -> (i32, i32) {
    %c0_i32 = arith.constant 0 : i32
    %c0_i32_0 = arith.constant 0 : i32
    %c0_i32_1 = arith.constant 0 : i32
    return %c0_i32, %c0_i32_0 : i32, i32
  }
  func.func @transform_2(%arg0: i32) -> (i32, i32) {
    %c0_i32 = arith.constant 0 : i32
    %c0_i32_0 = arith.constant 0 : i32
    return %arg0, %c0_i32 : i32, i32
  }
}

</mosaic_0001>

<bundles_post_ra>
// kernel: pallas_lstm_forward.1
= control target key start
LH: loop header
LB: loop body
LE: loop exit
PB: predicated region body
PF: predicated region fallthrough
CT: control target
= control target key end

     0   :  { %vm15_vm0 = vcmask 261120   ;;  %v1154_v0 = vmov 0.0|0.0   ;;  %vm1155_vm1 = vmmov 0   ;;  %v1156_v4 = vmov 0.0   ;;  %s1157_s18 = smov 64   ;;  %s1158_s19 = smov 32   ;;  %s1342_s1 = inlined_call_operand.vmem [shape: f32[32,128], index: 1, kind: input, shape index: {}]   ;;  %s1343_s0 = inlined_call_operand.vmem [shape: f32[64,128], index: 0, kind: input, shape index: {}]   ;;  %s1344_s2 = inlined_call_operand.vmem [shape: f32[64,32], index: 2, kind: output, shape index: {}]  }
   0x1   :  { %1052 = vmatprep.subr.bf16.mxu0 %v1154_v0  ;;  %v18_v1 = vld [vmem:[%s1342_s1] sm:$0xff]  ;;  %v19_v2 = vld [vmem:[%s1342_s1 + $0x8] sm:$0xff]  ;;  %v20_v3 = vld [vmem:[%s1342_s1 + $0x10] sm:$0xff]  ;;  %972 = vmatprep.mubr.msk.f32.mxu0 %vm1155_vm1, %v1156_v4  ;;  %16 = vst.msk [vmem:[#allocation2] sm:$0xff] %vm15_vm0, %v1156_v4 }
   0x2   :  { %17 = vst.msk [vmem:[#allocation3] sm:$0xff] %vm15_vm0, %v1156_v4  ;;  %v1191_v5 = vpack.c.bf16 %v19_v2, %v18_v1  ;;  %v21_v6 = vld [vmem:[%s1342_s1 + $0x18] sm:$0xff]  ;;  %1058 = vmatprep.subr.bf16.mxu1 %v1154_v0  ;;  %983 = vmatprep.mubr.msk.f32.mxu1 %vm1155_vm1, %v1156_v4  ;;  %v24_v9 = vld [vmem:[%s1343_s0] sm:$0xff]  ;;  %v889_v30 = vld [vmem:[%s1343_s0 + $0x8] sm:$0xff] }
   0x3   :  { %v1200_v7 = vpack.c.bf16 %v21_v6, %v20_v3  ;;  %v894_v49 = vld [vmem:[%s1343_s0 + $0x10] sm:$0xff] }
   0x4   :  { %1054 = vmatpush3.bf16.msra.mxu0 %v1191_v5  ;;  %1060 = vmatpush3.bf16.msra.mxu1 %v1191_v5 }
   0x5   :  { %1055 = vmatprep.subr.bf16.mxu0 %v1154_v0  ;;  %1061 = vmatprep.subr.bf16.mxu1 %v1154_v0 }
   0x8   :  { %1057 = vmatpush3.bf16.msra.mxu0 %v1200_v7  ;;  %v22_v8 = vld [vmem:[#allocation2] sm:$0xff]  ;;  %1063 = vmatpush3.bf16.msra.mxu1 %v1200_v7 }
   0x9   :  { %1064 = vmatprep.subr.bf16.mxu0 %v1154_v0  ;;  %1070 = vmatprep.subr.bf16.mxu1 %v1154_v0  ;;  %v23_v19 = vld [vmem:[#allocation3] sm:$0xff] }
   0xb   :  { %973 = vmatmul.mubr.msk.f32.vlgmr.msra.gmra.mrb[0].mxu0 %vm15_vm0, %v22_v8  ;;  %v899_v8 = vld [vmem:[%s1343_s0 + $0x18] sm:$0xff] }
   0xc   :  { %1066 = vmatpush3.bf16.msra.mxu0 %v1191_v5  ;;  %994 = vmatprep.mubr.msk.f32.mxu0 %vm1155_vm1, %v1156_v4 }
   0xd   :  { %1067 = vmatprep.subr.bf16.mxu0 %v1154_v0 }
  0x10   :  { %1069 = vmatpush3.bf16.msra.mxu0 %v1200_v7 }
  0x11   :  { %1076 = vmatprep.subr.bf16.mxu0 %v1154_v0 }
  0xde   :  { %v95_v10 = vpop.f32.mrb[0].mxu0 }
  0xdf   :  { %v99_v11 = vadd.f32 %v95_v10, %v24_v9  ;;  %v974_v12 = vpop.f32.mrb[1].mxu0 }
  0xe1   :  { %v887_v13 = vmul.f32 -1.442695, %v99_v11 }
  0xe3   :  { %1106 = vpow2.f32 %v887_v13 }
  0xed   :  { %v1107_v14 = vpop.eup %1106 }
  0xee   :  { %v103_v15 = vadd.f32 1.0, %v1107_v14 }
  0xf0   :  { %1108 = vrcp.f32 %v103_v15 }
  0xfa   :  { %v1109_v16 = vpop.eup %1108 }
  0xfb   :  { %v106_v17 = vmul.f32 2.0, %v1109_v16 }
  0xfd   :  { %v888_v18 = vadd.f32 -1.0, %v106_v17 }
  0xff   :  { %114 = vrot.lane.b32.xlu0 %v888_v18, %s1157_s18 }
 0x103   :  { %109 = vrot.lane.b32.xlu0 %v23_v19, %s1158_s19 }
 0x171   :  { %v115_v20 = vpop.permute.xlu0 %114 }
 0x172   :  { %v117_v21 = vmul.f32 %v1109_v16, %v115_v20 }
 0x174   :  { %119 = vrot.lane.b32.xlu1 %v117_v21, %s1158_s19 }
 0x175   :  { %v110_v22 = vpop.permute.xlu0 %109 }
 0x176   :  { %v112_v23 = vmul.f32 %v1109_v16, %v110_v22 }
 0x1e6   :  { %v120_v24 = vpop.permute.xlu1 %119 }
 0x1e7   :  { %v122_v25 = vadd.f32 %v120_v24, %v112_v23 }
 0x1e9   :  { %1110 = vtanh.f32 %v122_v25 }
 0x1f3   :  { %v1111_v26 = vpop.eup %1110 }
 0x1f4   :  { %125 = vrot.lane.b32.xlu1 %v1111_v26, %s1157_s18 }
 0x266   :  { %v126_v27 = vpop.permute.xlu1 %125 }
 0x267   :  { %v128_v28 = vmul.f32 %v1109_v16, %v126_v27  ;;  %v904_v27 = vld [vmem:[%s1343_s0 + $0x20] sm:$0xff] }
 0x269   :  { %130 = vrot.lane.b32.xlu0 %v128_v28, %s1158_s19 }
 0x2db   :  { %v131_v29 = vpop.permute.xlu0 %130 }
 0x2dc   :  { %133 = vst.msk [vmem:[%s1344_s2] sm:$0xff] %vm15_vm0, %v131_v29  ;;  %984 = vmatmul.mubr.msk.f32.vlgmr.msra.gmra.mrb[0].mxu1 %vm15_vm0, %v131_v29 }
 0x2dd   :  { %1072 = vmatpush3.bf16.msra.mxu1 %v1191_v5  ;;  %1005 = vmatprep.mubr.msk.f32.mxu1 %vm1155_vm1, %v1156_v4 }
 0x2de   :  { %1073 = vmatprep.subr.bf16.mxu1 %v1154_v0 }
 0x2e1   :  { %1075 = vmatpush3.bf16.msra.mxu1 %v1200_v7 }
 0x2e2   :  { %1082 = vmatprep.subr.bf16.mxu1 %v1154_v0 }
 0x3af   :  { %v204_v31 = vpop.f32.mrb[0].mxu1 }
 0x3b0   :  { %v208_v32 = vadd.f32 %v889_v30, %v204_v31  ;;  %v985_v33 = vpop.f32.mrb[1].mxu1 }
 0x3b2   :  { %v891_v34 = vmul.f32 -1.442695, %v208_v32 }
 0x3b4   :  { %1112 = vpow2.f32 %v891_v34 }
 0x3be   :  { %v1113_v35 = vpop.eup %1112 }
 0x3bf   :  { %v212_v36 = vadd.f32 1.0, %v1113_v35 }
 0x3c1   :  { %1114 = vrcp.f32 %v212_v36 }
 0x3cb   :  { %v1115_v37 = vpop.eup %1114 }
 0x3cc   :  { %v215_v38 = vmul.f32 2.0, %v1115_v37  ;;  %v217_v42 = vmul.f32 %v1115_v37, %v122_v25 }
 0x3ce   :  { %v892_v39 = vadd.f32 -1.0, %v215_v38 }
 0x3d0   :  { %219 = vrot.lane.b32.xlu1 %v892_v39, %s1157_s18 }
 0x442   :  { %v220_v40 = vpop.permute.xlu1 %219 }
 0x443   :  { %v222_v41 = vmul.f32 %v1115_v37, %v220_v40 }
 0x445   :  { %224 = vrot.lane.b32.xlu0 %v222_v41, %s1158_s19 }
 0x4b7   :  { %v225_v43 = vpop.permute.xlu0 %224 }
 0x4b8   :  { %v227_v44 = vadd.f32 %v225_v43, %v217_v42 }
 0x4ba   :  { %1116 = vtanh.f32 %v227_v44 }
 0x4c4   :  { %v1117_v45 = vpop.eup %1116 }
 0x4c5   :  { %230 = vrot.lane.b32.xlu1 %v1117_v45, %s1157_s18 }
 0x537   :  { %v231_v46 = vpop.permute.xlu1 %230 }
 0x538   :  { %v233_v47 = vmul.f32 %v1115_v37, %v231_v46  ;;  %v909_v46 = vld [vmem:[%s1343_s0 + $0x28] sm:$0xff] }
 0x53a   :  { %235 = vrot.lane.b32.xlu0 %v233_v47, %s1158_s19 }
 0x5ac   :  { %v236_v48 = vpop.permute.xlu0 %235 }
 0x5ad   :  { %893 = vst.msk [vmem:[%s1344_s2 + $0x8] sm:$0xff] %vm15_vm0, %v236_v48  ;;  %995 = vmatmul.mubr.msk.f32.vlgmr.msra.gmra.mrb[2].mxu0 %vm15_vm0, %v236_v48 }
 0x5ae   :  { %1078 = vmatpush3.bf16.msra.mxu0 %v1191_v5  ;;  %1016 = vmatprep.mubr.msk.f32.mxu0 %vm1155_vm1, %v1156_v4 }
 0x5af   :  { %1079 = vmatprep.subr.bf16.mxu0 %v1154_v0 }
 0x5b2   :  { %1081 = vmatpush3.bf16.msra.mxu0 %v1200_v7 }
 0x5b3   :  { %1088 = vmatprep.subr.bf16.mxu0 %v1154_v0 }
 0x680   :  { %v310_v50 = vpop.f32.mrb[2].mxu0 }
 0x681   :  { %v314_v51 = vadd.f32 %v894_v49, %v310_v50  ;;  %v996_v52 = vpop.f32.mrb[3].mxu0 }
 0x683   :  { %v896_v53 = vmul.f32 -1.442695, %v314_v51 }
 0x685   :  { %1118 = vpow2.f32 %v896_v53 }
 0x68f   :  { %v1119_v54 = vpop.eup %1118 }
 0x690   :  { %v318_v55 = vadd.f32 1.0, %v1119_v54 }
 0x692   :  { %1120 = vrcp.f32 %v318_v55 }
 0x69c   :  { %v1121_v56 = vpop.eup %1120 }
 0x69d   :  { %v321_v57 = vmul.f32 2.0, %v1121_v56  ;;  %v323_v61 = vmul.f32 %v1121_v56, %v227_v44 }
 0x69f   :  { %v897_v58 = vadd.f32 -1.0, %v321_v57 }
 0x6a1   :  { %325 = vrot.lane.b32.xlu1 %v897_v58, %s1157_s18 }
 0x713   :  { %v326_v59 = vpop.permute.xlu1 %325 }
 0x714   :  { %v328_v60 = vmul.f32 %v1121_v56, %v326_v59 }
 0x716   :  { %330 = vrot.lane.b32.xlu0 %v328_v60, %s1158_s19 }
 0x788   :  { %v331_v62 = vpop.permute.xlu0 %330 }
 0x789   :  { %v333_v63 = vadd.f32 %v331_v62, %v323_v61  ;;  %v914_v61 = vld [vmem:[%s1343_s0 + $0x30] sm:$0xff] }
 0x78b   :  { %1122 = vtanh.f32 %v333_v63 }
 0x795   :  { %v1123_v1 = vpop.eup %1122 }
 0x796   :  { %336 = vrot.lane.b32.xlu1 %v1123_v1, %s1157_s18 }
 0x808   :  { %v337_v2 = vpop.permute.xlu1 %336 }
 0x809   :  { %v339_v3 = vmul.f32 %v1121_v56, %v337_v2 }
 0x80b   :  { %341 = vrot.lane.b32.xlu0 %v339_v3, %s1158_s19 }
 0x87d   :  { %v342_v6 = vpop.permute.xlu0 %341 }
 0x87e   :  { %898 = vst.msk [vmem:[%s1344_s2 + $0x10] sm:$0xff] %vm15_vm0, %v342_v6  ;;  %1006 = vmatmul.mubr.msk.f32.vlgmr.msra.gmra.mrb[2].mxu1 %vm15_vm0, %v342_v6 }
 0x87f   :  { %1084 = vmatpush3.bf16.msra.mxu1 %v1191_v5  ;;  %1027 = vmatprep.mubr.msk.f32.mxu1 %vm1155_vm1, %v1156_v4 }
 0x880   :  { %1085 = vmatprep.subr.bf16.mxu1 %v1154_v0 }
 0x883   :  { %1087 = vmatpush3.bf16.msra.mxu1 %v1200_v7 }
 0x884   :  { %1094 = vmatprep.subr.bf16.mxu1 %v1154_v0 }
 0x951   :  { %v416_v9 = vpop.f32.mrb[2].mxu1 }
 0x952   :  { %v420_v10 = vadd.f32 %v899_v8, %v416_v9  ;;  %v1007_v11 = vpop.f32.mrb[3].mxu1 }
 0x954   :  { %v901_v12 = vmul.f32 -1.442695, %v420_v10 }
 0x956   :  { %1124 = vpow2.f32 %v901_v12 }
 0x960   :  { %v1125_v13 = vpop.eup %1124 }
 0x961   :  { %v424_v14 = vadd.f32 1.0, %v1125_v13 }
 0x963   :  { %1126 = vrcp.f32 %v424_v14 }
 0x96d   :  { %v1127_v15 = vpop.eup %1126 }
 0x96e   :  { %v427_v16 = vmul.f32 2.0, %v1127_v15  ;;  %v429_v20 = vmul.f32 %v1127_v15, %v333_v63 }
 0x970   :  { %v902_v17 = vadd.f32 -1.0, %v427_v16 }
 0x972   :  { %431 = vrot.lane.b32.xlu1 %v902_v17, %s1157_s18 }
 0x9e4   :  { %v432_v18 = vpop.permute.xlu1 %431 }
 0x9e5   :  { %v434_v19 = vmul.f32 %v1127_v15, %v432_v18 }
 0x9e7   :  { %436 = vrot.lane.b32.xlu0 %v434_v19, %s1158_s19 }
 0xa59   :  { %v437_v21 = vpop.permute.xlu0 %436 }
 0xa5a   :  { %v439_v22 = vadd.f32 %v437_v21, %v429_v20  ;;  %v919_v20 = vld [vmem:[%s1343_s0 + $0x38] sm:$0xff]  ;;  %s1159_s0 = smov 96  }
 0xa5c   :  { %1128 = vtanh.f32 %v439_v22 }
 0xa66   :  { %v1129_v23 = vpop.eup %1128 }
 0xa67   :  { %442 = vrot.lane.b32.xlu1 %v1129_v23, %s1157_s18 }
 0xad9   :  { %v443_v24 = vpop.permute.xlu1 %442 }
 0xada   :  { %v445_v25 = vmul.f32 %v1127_v15, %v443_v24 }
 0xadc   :  { %447 = vrot.lane.b32.xlu0 %v445_v25, %s1158_s19 }
 0xb4e   :  { %v448_v26 = vpop.permute.xlu0 %447 }
 0xb4f   :  { %903 = vst.msk [vmem:[%s1344_s2 + $0x18] sm:$0xff] %vm15_vm0, %v448_v26  ;;  %1017 = vmatmul.mubr.msk.f32.vlgmr.msra.gmra.mrb[4].mxu0 %vm15_vm0, %v448_v26 }
 0xb50   :  { %1090 = vmatpush3.bf16.msra.mxu0 %v1191_v5  ;;  %1038 = vmatprep.mubr.msk.f32.mxu0 %vm1155_vm1, %v1156_v4 }
 0xb51   :  { %1091 = vmatprep.subr.bf16.mxu0 %v1154_v0 }
 0xb54   :  { %1093 = vmatpush3.bf16.msra.mxu0 %v1200_v7 }
 0xc22   :  { %v522_v28 = vpop.f32.mrb[4].mxu0 }
 0xc23   :  { %v526_v29 = vadd.f32 %v904_v27, %v522_v28  ;;  %v1018_v30 = vpop.f32.mrb[5].mxu0 }
 0xc25   :  { %v906_v31 = vmul.f32 -1.442695, %v526_v29 }
 0xc27   :  { %1130 = vpow2.f32 %v906_v31 }
 0xc31   :  { %v1131_v32 = vpop.eup %1130 }
 0xc32   :  { %v530_v33 = vadd.f32 1.0, %v1131_v32 }
 0xc34   :  { %1132 = vrcp.f32 %v530_v33 }
 0xc3e   :  { %v1133_v34 = vpop.eup %1132 }
 0xc3f   :  { %v533_v35 = vmul.f32 2.0, %v1133_v34  ;;  %v535_v39 = vmul.f32 %v1133_v34, %v439_v22 }
 0xc41   :  { %v907_v36 = vadd.f32 -1.0, %v533_v35 }
 0xc43   :  { %537 = vrot.lane.b32.xlu1 %v907_v36, %s1157_s18 }
 0xcb5   :  { %v538_v37 = vpop.permute.xlu1 %537 }
 0xcb6   :  { %v540_v38 = vmul.f32 %v1133_v34, %v538_v37 }
 0xcb8   :  { %542 = vrot.lane.b32.xlu0 %v540_v38, %s1158_s19 }
 0xd2a   :  { %v543_v40 = vpop.permute.xlu0 %542 }
 0xd2b   :  { %v545_v41 = vadd.f32 %v543_v40, %v535_v39 }
 0xd2d   :  { %1134 = vtanh.f32 %v545_v41 }
 0xd37   :  { %v1135_v42 = vpop.eup %1134 }
 0xd38   :  { %548 = vrot.lane.b32.xlu1 %v1135_v42, %s1157_s18 }
 0xdaa   :  { %v549_v43 = vpop.permute.xlu1 %548 }
 0xdab   :  { %v551_v44 = vmul.f32 %v1133_v34, %v549_v43 }
 0xdad   :  { %553 = vrot.lane.b32.xlu0 %v551_v44, %s1158_s19 }
 0xe1f   :  { %v554_v45 = vpop.permute.xlu0 %553 }
 0xe20   :  { %908 = vst.msk [vmem:[%s1344_s2 + $0x20] sm:$0xff] %vm15_vm0, %v554_v45  ;;  %1028 = vmatmul.mubr.msk.f32.vlgmr.msra.gmra.mrb[4].mxu1 %vm15_vm0, %v554_v45 }
 0xe21   :  { %1096 = vmatpush3.bf16.msra.mxu1 %v1191_v5  ;;  %1049 = vmatprep.mubr.msk.f32.mxu1 %vm1155_vm1, %v1156_v4 }
 0xe22   :  { %1097 = vmatprep.subr.bf16.mxu1 %v1154_v0 }
 0xe25   :  { %1099 = vmatpush3.bf16.msra.mxu1 %v1200_v7 }
 0xef3   :  { %v628_v47 = vpop.f32.mrb[4].mxu1 }
 0xef4   :  { %v632_v48 = vadd.f32 %v909_v46, %v628_v47  ;;  %v1029_v49 = vpop.f32.mrb[5].mxu1 }
 0xef6   :  { %v911_v50 = vmul.f32 -1.442695, %v632_v48 }
 0xef8   :  { %1136 = vpow2.f32 %v911_v50 }
 0xf02   :  { %v1137_v51 = vpop.eup %1136 }
 0xf03   :  { %v636_v52 = vadd.f32 1.0, %v1137_v51 }
 0xf05   :  { %1138 = vrcp.f32 %v636_v52 }
 0xf0f   :  { %v1139_v5 = vpop.eup %1138 }
 0xf10   :  { %v639_v53 = vmul.f32 2.0, %v1139_v5  ;;  %v641_v7 = vmul.f32 %v1139_v5, %v545_v41 }
 0xf12   :  { %v912_v54 = vadd.f32 -1.0, %v639_v53 }
 0xf14   :  { %643 = vrot.lane.b32.xlu1 %v912_v54, %s1157_s18 }
 0xf86   :  { %v644_v0 = vpop.permute.xlu1 %643 }
 0xf87   :  { %v646_v4 = vmul.f32 %v1139_v5, %v644_v0 }
 0xf89   :  { %648 = vrot.lane.b32.xlu0 %v646_v4, %s1158_s19 }
 0xffb   :  { %v649_v55 = vpop.permute.xlu0 %648 }
 0xffc   :  { %v651_v56 = vadd.f32 %v649_v55, %v641_v7 }
 0xffe   :  { %1140 = vtanh.f32 %v651_v56 }
0x1008   :  { %v1141_v57 = vpop.eup %1140 }
0x1009   :  { %654 = vrot.lane.b32.xlu1 %v1141_v57, %s1157_s18 }
0x107b   :  { %v655_v58 = vpop.permute.xlu1 %654 }
0x107c   :  { %v657_v59 = vmul.f32 %v1139_v5, %v655_v58 }
0x107e   :  { %659 = vrot.lane.b32.xlu0 %v657_v59, %s1158_s19 }
0x10f0   :  { %v660_v60 = vpop.permute.xlu0 %659 }
0x10f1   :  { %913 = vst.msk [vmem:[%s1344_s2 + $0x28] sm:$0xff] %vm15_vm0, %v660_v60  ;;  %1039 = vmatmul.mubr.msk.f32.vlgmr.msra.gmra.mrb[6].mxu0 %vm15_vm0, %v660_v60 }
0x11c4   :  { %v734_v62 = vpop.f32.mrb[6].mxu0 }
0x11c5   :  { %v738_v63 = vadd.f32 %v914_v61, %v734_v62  ;;  %v1040_v1 = vpop.f32.mrb[7].mxu0 }
0x11c7   :  { %v916_v2 = vmul.f32 -1.442695, %v738_v63 }
0x11c9   :  { %1142 = vpow2.f32 %v916_v2 }
0x11d3   :  { %v1143_v3 = vpop.eup %1142 }
0x11d4   :  { %v742_v6 = vadd.f32 1.0, %v1143_v3 }
0x11d6   :  { %1144 = vrcp.f32 %v742_v6 }
0x11e0   :  { %v1145_v8 = vpop.eup %1144 }
0x11e1   :  { %v745_v9 = vmul.f32 2.0, %v1145_v8  ;;  %v747_v13 = vmul.f32 %v1145_v8, %v651_v56 }
0x11e3   :  { %v917_v10 = vadd.f32 -1.0, %v745_v9 }
0x11e5   :  { %749 = vrot.lane.b32.xlu1 %v917_v10, %s1157_s18 }
0x1257   :  { %v750_v11 = vpop.permute.xlu1 %749 }
0x1258   :  { %v752_v12 = vmul.f32 %v1145_v8, %v750_v11 }
0x125a   :  { %754 = vrot.lane.b32.xlu0 %v752_v12, %s1158_s19 }
0x12cc   :  { %v755_v14 = vpop.permute.xlu0 %754 }
0x12cd   :  { %v757_v15 = vadd.f32 %v755_v14, %v747_v13 }
0x12cf   :  { %1146 = vtanh.f32 %v757_v15 }
0x12d9   :  { %v1147_v16 = vpop.eup %1146 }
0x12da   :  { %760 = vrot.lane.b32.xlu1 %v1147_v16, %s1157_s18 }
0x134c   :  { %v761_v17 = vpop.permute.xlu1 %760 }
0x134d   :  { %v763_v18 = vmul.f32 %v1145_v8, %v761_v17 }
0x134f   :  { %765 = vrot.lane.b32.xlu0 %v763_v18, %s1158_s19 }
0x13c1   :  { %v766_v19 = vpop.permute.xlu0 %765 }
0x13c2   :  { %918 = vst.msk [vmem:[%s1344_s2 + $0x30] sm:$0xff] %vm15_vm0, %v766_v19  ;;  %1050 = vmatmul.mubr.msk.f32.vlgmr.msra.gmra.mrb[6].mxu1 %vm15_vm0, %v766_v19 }
0x1495   :  { %v840_v21 = vpop.f32.mrb[6].mxu1 }
0x1496   :  { %v844_v22 = vadd.f32 %v919_v20, %v840_v21  ;;  %v1051_v23 = vpop.f32.mrb[7].mxu1 }
0x1498   :  { %v921_v24 = vmul.f32 -1.442695, %v844_v22 }
0x149a   :  { %1148 = vpow2.f32 %v921_v24 }
0x14a4   :  { %v1149_v25 = vpop.eup %1148 }
0x14a5   :  { %v848_v26 = vadd.f32 1.0, %v1149_v25 }
0x14a7   :  { %1150 = vrcp.f32 %v848_v26 }
0x14b1   :  { %v1151_v27 = vpop.eup %1150 }
0x14b2   :  { %v851_v28 = vmul.f32 2.0, %v1151_v27  ;;  %v853_v32 = vmul.f32 %v1151_v27, %v757_v15 }
0x14b4   :  { %v922_v29 = vadd.f32 -1.0, %v851_v28 }
0x14b6   :  { %855 = vrot.lane.b32.xlu1 %v922_v29, %s1157_s18 }
0x1528   :  { %v856_v30 = vpop.permute.xlu1 %855 }
0x1529   :  { %v858_v31 = vmul.f32 %v1151_v27, %v856_v30 }
0x152b   :  { %860 = vrot.lane.b32.xlu0 %v858_v31, %s1158_s19 }
0x159d   :  { %v861_v33 = vpop.permute.xlu0 %860 }
0x159e   :  { %v863_v34 = vadd.f32 %v861_v33, %v853_v32 }
0x15a0   :  { %1152 = vtanh.f32 %v863_v34 }
0x15aa   :  { %v1153_v35 = vpop.eup %1152 }
0x15ab   :  { %866 = vrot.lane.b32.xlu1 %v1153_v35, %s1157_s18 }
0x15af   :  { %878 = vrot.lane.b32.xlu1 %v863_v34, %s1159_s0 }
0x161d   :  { %v867_v36 = vpop.permute.xlu1 %866 }
0x161e   :  { %v869_v37 = vmul.f32 %v1151_v27, %v867_v36 }
0x1620   :  { %871 = vrot.lane.b32.xlu0 %v869_v37, %s1158_s19 }
0x1621   :  { %v879_v38 = vpop.permute.xlu1 %878 }
0x1622   :  { %881 = vst.msk [vmem:[#allocation3] sm:$0xff] %vm15_vm0, %v879_v38 }
0x1692   :  { %v872_v39 = vpop.permute.xlu0 %871 }
0x1693   :  { %923 = vst.msk [vmem:[%s1344_s2 + $0x38] sm:$0xff] %vm15_vm0, %v872_v39  ;;  %876 = vst.msk [vmem:[#allocation2] sm:$0xff] %vm15_vm0, %v872_v39 }

</bundles_post_ra>
